<compile_context>
chip_gen: v7x
topology: tpu7x:2x2x1
jax: 0.10.0
libtpu: 0.0.40
codegen_flags: <defaults>
</compile_context>

<pallas_src>
import functools
import math

import jax
import jax.numpy as jnp
from jax.experimental import pallas as pl
from jax.experimental.pallas import tpu as pltpu


# --------------------------- hardware / tiling helpers ---------------------- #

@functools.lru_cache(maxsize=None)
def _vmem_limit_bytes():
    """Generation-aware scoped-VMEM limit (~75% of physical, capped)."""
    cap = 64 * 1024 * 1024                      # conservative default (v7x)
    try:
        info = pltpu.get_tpu_info()
        cap = int(getattr(info, "vmem_capacity_bytes", cap))
    except Exception:
        pass
    return min((cap * 3) // 4, 100 * 1024 * 1024)


def _pick_tile(dim, preferred, aligns=(128, 8)):
    """Largest tile <= preferred that divides `dim` and is a multiple of one of
    `aligns` (tried in order).  Falls back to the full dim (always legal)."""
    if dim <= preferred:
        return dim
    for align in aligns:
        t = (preferred // align) * align
        while t >= align:
            if dim % t == 0:
                return t
            t -= align
    return dim


def _pick_group(bh, target):
    """Largest divisor of bh that is <= target (heads packed per grid step)."""
    g = max(1, min(bh, int(target)))
    while bh % g != 0:
        g -= 1
    return g


# ----------------------------- Pallas kernels ------------------------------ #

def _matmul_bias_kernel(x_ref, w_ref, b_ref, o_ref, acc_ref):
    """Tiled o = x @ w + b with fp32 accumulation; x/w already bf16."""
    k = pl.program_id(2)
    prod = jnp.dot(x_ref[...], w_ref[...], preferred_element_type=jnp.float32)

    @pl.when(k == 0)
    def _():
        acc_ref[...] = prod            # first partial product written directly

    @pl.when(k > 0)
    def _():
        acc_ref[...] += prod

    @pl.when(k == pl.num_programs(2) - 1)
    def _():
        o_ref[...] = (acc_ref[...] + b_ref[...].astype(jnp.float32)).astype(o_ref.dtype)


def _attn_probs_kernel(q_ref, k_ref, v_ref, ctx_ref, attn_ref, *, scale):
    """Scaled-dot attention for a group of G heads; materializes probabilities.

    # TODO(synk): for very long Sk where even G=1 does not fit VMEM, switch to
    # a two-pass (lse pass + normalize pass) scheme so the returned attention
    # stays exact while the score tile is bounded.
    """
    # fold 1/sqrt(q_dim) into q (O(Sq*H)) instead of the O(Sq*Sk) scores
    q = (q_ref[...].astype(jnp.float32) * scale).astype(jnp.bfloat16)   # (G,Sq,H)
    k = k_ref[...]                                                      # (G,Sk,H) bf16
    v = v_ref[...]                                                      # (G,Sk,H) bf16

    s = jax.lax.dot_general(q, k, (((2,), (2,)), ((0,), (0,))),
                            preferred_element_type=jnp.float32)         # (G,Sq,Sk)
    s = s - jnp.max(s, axis=-1, keepdims=True)
    p = jnp.exp(s)
    inv = 1.0 / jnp.sum(p, axis=-1, keepdims=True)     # exact fp32 softmax
    p = p * inv
    attn_ref[...] = p.astype(attn_ref.dtype)

    ctx = jax.lax.dot_general(p.astype(jnp.bfloat16), v,
                              (((2,), (1,)), ((0,), (0,))),
                              preferred_element_type=jnp.float32)       # (G,Sq,H)
    ctx_ref[...] = ctx.astype(ctx_ref.dtype)


def _flash_attn_kernel(q_ref, k_ref, v_ref, o_ref, m_sc, l_sc, acc_sc, *, scale):
    """Flash-style online-softmax attention (no probability output)."""
    ki = pl.program_id(2)

    @pl.when(ki == 0)
    def _():
        m_sc[...] = jnp.full_like(m_sc, -jnp.inf)
        l_sc[...] = jnp.zeros_like(l_sc)
        acc_sc[...] = jnp.zeros_like(acc_sc)

    q = (q_ref[...].astype(jnp.float32) * scale).astype(jnp.bfloat16)   # (G,tq,H)
    s = jax.lax.dot_general(q, k_ref[...], (((2,), (2,)), ((0,), (0,))),
                            preferred_element_type=jnp.float32)         # (G,tq,tk)
    m_new = jnp.maximum(m_sc[...], jnp.max(s, axis=-1, keepdims=True))
    alpha = jnp.exp(m_sc[...] - m_new)
    p = jnp.exp(s - m_new)
    l_sc[...] = alpha * l_sc[...] + jnp.sum(p, axis=-1, keepdims=True)
    acc_sc[...] = alpha * acc_sc[...] + jax.lax.dot_general(
        p.astype(jnp.bfloat16), v_ref[...], (((2,), (1,)), ((0,), (0,))),
        preferred_element_type=jnp.float32)
    m_sc[...] = m_new

    @pl.when(ki == pl.num_programs(2) - 1)
    def _():
        inv = 1.0 / l_sc[...]
        o_ref[...] = (acc_sc[...] * inv).astype(o_ref.dtype)


def _fc_res_ln_kernel(ctx_ref, res_ref, w_ref, b_ref, g_ref, beta_ref, o_ref,
                      acc_ref, *, eps):
    """K-tiled fc matmul + residual + LayerNorm (fp32 accumulator)."""
    k = pl.program_id(1)
    prod = jnp.dot(ctx_ref[...], w_ref[...], preferred_element_type=jnp.float32)

    @pl.when(k == 0)
    def _():
        acc_ref[...] = prod

    @pl.when(k > 0)
    def _():
        acc_ref[...] += prod

    @pl.when(k == pl.num_programs(1) - 1)
    def _():
        z = res_ref[...].astype(jnp.float32) + acc_ref[...] + b_ref[...].astype(jnp.float32)
        mean = jnp.mean(z, axis=-1, keepdims=True)
        cen = z - mean
        var = jnp.mean(cen * cen, axis=-1, keepdims=True)
        zn = cen * jax.lax.rsqrt(var + eps)
        o_ref[...] = (zn * g_ref[...] + beta_ref[...]).astype(o_ref.dtype)


# ------------------------------- wrappers ---------------------------------- #

def _linear(x, w, b, *, out_dtype=jnp.bfloat16):
    """Tiled, pipelined x @ w + b.  x/w expected bf16, b fp32."""
    M, K = x.shape
    N = w.shape[1]
    limit = _vmem_limit_bytes()
    big = limit >= 64 * 1024 * 1024
    tm = _pick_tile(M, 512 if big else 256, (8,))
    tn = _pick_tile(N, 512 if big else 256, (256, 128))
    tk = _pick_tile(K, 512, (256, 128))
    grid = (M // tm, N // tn, K // tk)
    return pl.pallas_call(
        _matmul_bias_kernel,
        out_shape=jax.ShapeDtypeStruct((M, N), out_dtype),
        grid_spec=pltpu.PrefetchScalarGridSpec(
            num_scalar_prefetch=0,
            grid=grid,
            in_specs=[pl.BlockSpec((tm, tk), lambda i, j, k: (i, k)),
                      pl.BlockSpec((tk, tn), lambda i, j, k: (k, j)),
                      pl.BlockSpec((1, tn), lambda i, j, k: (0, j))],
            out_specs=pl.BlockSpec((tm, tn), lambda i, j, k: (i, j)),
            scratch_shapes=[pltpu.VMEM((tm, tn), jnp.float32)]),
        compiler_params=pltpu.CompilerParams(
            dimension_semantics=("parallel", "parallel", "arbitrary"),
            vmem_limit_bytes=limit),
    )(x, w, b)


def _scaled_dot_attention(qh, kh, vh, scale, *, attn_dtype=jnp.float32):
    """Per-head-group scaled-dot attention; returns (ctx bf16, probabilities)."""
    BH, Sq, H = qh.shape
    Sk = kh.shape[1]
    limit = _vmem_limit_bytes()
    attn_bytes = jnp.dtype(attn_dtype).itemsize

    # VMEM budget per single head per grid step (inputs/outputs double-buffered
    # by the pipeline + in-kernel fp32 score/prob temporaries).
    per_head = (2 * Sq * H * 2            # q in (bf16)
                + 2 * 2 * Sk * H * 2      # k + v in (bf16)
                + 2 * Sq * H * 2          # ctx out (bf16)
                + 2 * Sq * Sk * attn_bytes  # attn out
                + 3 * Sq * Sk * 4)        # fp32 score/prob temporaries
    g = max(1, min(BH, (limit // 2) // max(per_head, 1)))
    if BH >= 2:
        g = min(g, max(1, BH // 2))       # keep >= 2 grid steps (pipeline/megacore)
    G = _pick_group(BH, g)

    ctx, attn = pl.pallas_call(
        functools.partial(_attn_probs_kernel, scale=scale),
        out_shape=(jax.ShapeDtypeStruct((BH, Sq, H), jnp.bfloat16),
                   jax.ShapeDtypeStruct((BH, Sq, Sk), attn_dtype)),
        grid_spec=pltpu.PrefetchScalarGridSpec(
            num_scalar_prefetch=0,
            grid=(BH // G,),
            in_specs=[pl.BlockSpec((G, Sq, H), lambda i: (i, 0, 0)),
                      pl.BlockSpec((G, Sk, H), lambda i: (i, 0, 0)),
                      pl.BlockSpec((G, Sk, H), lambda i: (i, 0, 0))],
            out_specs=(pl.BlockSpec((G, Sq, H), lambda i: (i, 0, 0)),
                       pl.BlockSpec((G, Sq, Sk), lambda i: (i, 0, 0)))),
        compiler_params=pltpu.CompilerParams(
            dimension_semantics=("parallel",),
            vmem_limit_bytes=limit),
    )(qh, kh, vh)
    return ctx, attn


def _flash_attention(qh, kh, vh, scale):
    """Flash-style attention: ctx only, bounded VMEM for long sequences."""
    BH, Sq, H = qh.shape
    Sk = kh.shape[1]
    limit = _vmem_limit_bytes()

    tq = _pick_tile(Sq, 256, (8,))
    tk = _pick_tile(Sk, 512, (128, 8))

    per_head = (2 * tq * H * 2            # q in
                + 2 * 2 * tk * H * 2      # k + v in
                + 2 * tq * H * 2          # ctx out
                + tq * (H + 2) * 4        # scratch m/l/acc
                + 3 * tq * tk * 4)        # fp32 score temporaries
    g = max(1, min(BH, (limit // 2) // max(per_head, 1)))
    if (Sq // tq) * (Sk // tk) == 1 and BH >= 2:
        g = min(g, max(1, BH // 2))       # keep >= 2 grid steps overall
    G = _pick_group(BH, g)

    return pl.pallas_call(
        functools.partial(_flash_attn_kernel, scale=scale),
        out_shape=jax.ShapeDtypeStruct((BH, Sq, H), jnp.bfloat16),
        grid_spec=pltpu.PrefetchScalarGridSpec(
            num_scalar_prefetch=0,
            grid=(BH // G, Sq // tq, Sk // tk),
            in_specs=[pl.BlockSpec((G, tq, H), lambda g, qi, ki: (g, qi, 0)),
                      pl.BlockSpec((G, tk, H), lambda g, qi, ki: (g, ki, 0)),
                      pl.BlockSpec((G, tk, H), lambda g, qi, ki: (g, ki, 0))],
            out_specs=pl.BlockSpec((G, tq, H), lambda g, qi, ki: (g, qi, 0)),
            scratch_shapes=[pltpu.VMEM((G, tq, 1), jnp.float32),
                            pltpu.VMEM((G, tq, 1), jnp.float32),
                            pltpu.VMEM((G, tq, H), jnp.float32)]),
        compiler_params=pltpu.CompilerParams(
            dimension_semantics=("parallel", "parallel", "arbitrary"),
            vmem_limit_bytes=limit),
    )(qh, kh, vh)


def _fc_residual_layernorm(ctx2, res2, w, b, gamma, beta, *, eps=1e-5):
    """K-tiled fused fc + residual + LayerNorm (fc weight never fully resident)."""
    M, Kd = ctx2.shape
    N = w.shape[1]
    limit = _vmem_limit_bytes()
    big = limit >= 64 * 1024 * 1024
    tm = _pick_tile(M, 512 if big else 256, (8,))
    tk = _pick_tile(Kd, 512, (256, 128))
    grid = (M // tm, Kd // tk)
    return pl.pallas_call(
        functools.partial(_fc_res_ln_kernel, eps=eps),
        out_shape=jax.ShapeDtypeStruct((M, N), jnp.float32),
        grid_spec=pltpu.PrefetchScalarGridSpec(
            num_scalar_prefetch=0,
            grid=grid,
            in_specs=[pl.BlockSpec((tm, tk), lambda i, k: (i, k)),
                      pl.BlockSpec((tm, N), lambda i, k: (i, 0)),
                      pl.BlockSpec((tk, N), lambda i, k: (k, 0)),
                      pl.BlockSpec((1, N), lambda i, k: (0, 0)),
                      pl.BlockSpec((1, N), lambda i, k: (0, 0)),
                      pl.BlockSpec((1, N), lambda i, k: (0, 0))],
            out_specs=pl.BlockSpec((tm, N), lambda i, k: (i, 0)),
            scratch_shapes=[pltpu.VMEM((tm, N), jnp.float32)]),
        compiler_params=pltpu.CompilerParams(
            dimension_semantics=("parallel", "arbitrary"),
            vmem_limit_bytes=limit),
    )(ctx2, res2, w, b, gamma, beta)


def full_feat_mha(q, k, v, params, num_head, *, attn_dtype=jnp.float32,
                  return_attn=True, attention_mask=None):
    """Forward pass of FullFeatMultiHeadAttention. Returns (output, attention).

    attn_dtype defaults to fp32 because the attention probabilities are a
    user-visible output of the module; pass jnp.bfloat16 to halve the O(Sq*Sk)
    writeback, or return_attn=False to skip it entirely (flash path).
    """
    if attention_mask is not None:
        # TODO(synk): mask semantics of build_attention are not visible in the
        # reference snippet; the masked path is not implemented.
        raise NotImplementedError("attention_mask is not supported")

    B, Sq, H = q.shape
    Sk = k.shape[1]
    nh = num_head

    # bf16 operand streams (cast once here; fp32 accumulation inside kernels)
    w_q = params["w_q"].astype(jnp.bfloat16)
    w_k = params["w_k"].astype(jnp.bfloat16)
    w_v = params["w_v"].astype(jnp.bfloat16)
    w_fc = params["w_fc"].astype(jnp.bfloat16)
    q2 = q.reshape(B * Sq, H).astype(jnp.bfloat16)
    k2 = k.reshape(B * Sk, H).astype(jnp.bfloat16)
    v2 = v.reshape(B * Sk, H).astype(jnp.bfloat16)

    # projections (tiled + pipelined Pallas matmuls, bf16 outputs)
    qp = _linear(q2, w_q, params["b_q"])   # (B*Sq, H*nh) bf16
    kp = _linear(k2, w_k, params["b_k"])
    vp = _linear(v2, w_v, params["b_v"])

    # exact replication of PyTorch's raw .view(batch*num_head, -1, h_size)
    qh = qp.reshape(B * nh, Sq, H)
    kh = kp.reshape(B * nh, Sk, H)
    vh = vp.reshape(B * nh, Sk, H)

    scale = 1.0 / math.sqrt(float(H * nh))   # q_dim passed to build_attention
    if return_attn:
        ctx, attn = _scaled_dot_attention(qh, kh, vh, scale, attn_dtype=attn_dtype)
    else:
        ctx = _flash_attention(qh, kh, vh, scale)
        attn = None

    # exact replication of .contiguous().view(batch, -1, h_size*num_head)
    ctx2 = ctx.reshape(B * Sq, H * nh)
    res2 = q.reshape(B * Sq, H)

    out = _fc_residual_layernorm(ctx2, res2, w_fc, params["b_fc"],
                                 params["gamma"], params["beta"])
    return out.reshape(B, Sq, H), attn


# --------------------------- parameter creation ----------------------------- #

def init_params(key, model_dim, num_head):
    H, nh = model_dim, num_head
    keys = jax.random.split(key, 8)

    def lin(kw, kb, fan_in, fan_out):
        bound = 1.0 / math.sqrt(fan_in)
        w = jax.random.uniform(kw, (fan_in, fan_out), jnp.float32, -bound, bound)
        b = jax.random.uniform(kb, (1, fan_out), jnp.float32, -bound, bound)
        return w, b

    w_q, b_q = lin(keys[0], keys[1], H, H * nh)
    w_k, b_k = lin(keys[2], keys[3], H, H * nh)
    w_v, b_v = lin(keys[4], keys[5], H, H * nh)
    w_fc, b_fc = lin(keys[6], keys[7], H * nh, H)
    return dict(w_q=w_q, b_q=b_q, w_k=w_k, b_k=b_k, w_v=w_v, b_v=b_v,
                w_fc=w_fc, b_fc=b_fc,
                gamma=jnp.ones((1, H), jnp.float32),
                beta=jnp.zeros((1, H), jnp.float32))


# --------------------------------- main ------------------------------------- #

if __name__ == "__main__":
    B, S, model_dim, num_head = 2, 8, 32, 4

    key = jax.random.PRNGKey(0)
    kq, kk, kv, kp = jax.random.split(key, 4)
    q = jax.random.normal(kq, (B, S, model_dim), jnp.float32)
    k = jax.random.normal(kk, (B, S, model_dim), jnp.float32)
    v = jax.random.normal(kv, (B, S, model_dim), jnp.float32)
    params = init_params(kp, model_dim, num_head)

    # path 1: full module semantics (returns attention probabilities)
    out, attn = full_feat_mha(q, k, v, params, num_head)
    jax.block_until_ready((out, attn))

    assert out.shape == (B, S, model_dim)
    assert attn.shape == (B * num_head, S, S)
    assert bool(jnp.all(jnp.isfinite(out))) and bool(jnp.all(jnp.isfinite(attn)))
    # exact softmax -> rows sum to 1 tightly
    assert bool(jnp.allclose(jnp.sum(attn.astype(jnp.float32), axis=-1), 1.0, atol=1e-3))

    # path 2: flash (online-softmax) variant, skips the probability writeback
    out_flash, attn_none = full_feat_mha(q, k, v, params, num_head, return_attn=False)
    jax.block_until_ready(out_flash)
    assert attn_none is None
    assert out_flash.shape == (B, S, model_dim)
    assert bool(jnp.all(jnp.isfinite(out_flash)))
    assert bool(jnp.allclose(out, out_flash, atol=1e-1, rtol=1e-1))

    print("KERNEL_OK")
</pallas_src>

<mosaic_0001>
module attributes {stable_mosaic.version = 11 : i64} {
  func.func @_matmul_bias_kernel(%arg0: i32, %arg1: i32, %arg2: i32, %arg3: memref<16x32xbf16, #tpu.memory_space<vmem>>, %arg4: memref<32x128xbf16, #tpu.memory_space<vmem>>, %arg5: memref<1x128xf32, #tpu.memory_space<vmem>>, %arg6: memref<16x128xbf16, #tpu.memory_space<vmem>>, %arg7: memref<16x128xf32, #tpu.memory_space<vmem>>) attributes {dimension_semantics = [#tpu.dimension_semantics<parallel>, #tpu.dimension_semantics<parallel>, #tpu.dimension_semantics<arbitrary>], iteration_bounds = array<i64: 1, 1, 1>, scalar_prefetch = 0 : i64, scratch_operands = 1 : i64, tpu.core_type = #tpu.core_type<tc>, window_params = [{transform_indices = @transform_0, window_bounds = array<i64: 16, 32>}, {transform_indices = @transform_1, window_bounds = array<i64: 32, 128>}, {transform_indices = @transform_2, window_bounds = array<i64: 1, 128>}, {transform_indices = @transform_3, window_bounds = array<i64: 16, 128>}]} {
    %c0 = arith.constant 0 : index
    %c0_0 = arith.constant 0 : index
    %0 = vector.load %arg3[%c0, %c0_0] : memref<16x32xbf16, #tpu.memory_space<vmem>>, vector<16x32xbf16>
    %c0_1 = arith.constant 0 : index
    %c0_2 = arith.constant 0 : index
    %1 = vector.load %arg4[%c0_1, %c0_2] : memref<32x128xbf16, #tpu.memory_space<vmem>>, vector<32x128xbf16>
    %cst = arith.constant dense<0.000000e+00> : vector<16x128xf32>
    %2 = tpu.matmul %0, %1, %cst {dimension_numbers = #tpu.dot_dimension_numbers<[1], [0], [0], [1], [0, 0, 1, 1], [], []>} : vector<16x32xbf16>, vector<32x128xbf16>, vector<16x128xf32> -> vector<16x128xf32>
    %c0_i32 = arith.constant 0 : i32
    %3 = arith.cmpi eq, %arg2, %c0_i32 : i32
    %4 = arith.extui %3 : i1 to i32
    %c0_i32_3 = arith.constant 0 : i32
    %5 = arith.cmpi ne, %4, %c0_i32_3 : i32
    scf.if %5 {
      %c0_8 = arith.constant 0 : index
      %c0_9 = arith.constant 0 : index
      %12 = vector.load %arg7[%c0_8, %c0_9] : memref<16x128xf32, #tpu.memory_space<vmem>>, vector<16x128xf32>
      tpu.vector_store %arg7[%c0_8, %c0_9], %2 {strides = array<i32>} : memref<16x128xf32, #tpu.memory_space<vmem>>, vector<16x128xf32>,
    } else {
    }
    %c0_i32_4 = arith.constant 0 : i32
    %6 = arith.cmpi sgt, %arg2, %c0_i32_4 : i32
    %7 = arith.extui %6 : i1 to i32
    %c0_i32_5 = arith.constant 0 : i32
    %8 = arith.cmpi ne, %7, %c0_i32_5 : i32
    scf.if %8 {
      %c0_8 = arith.constant 0 : index
      %c0_9 = arith.constant 0 : index
      %12 = vector.load %arg7[%c0_8, %c0_9] : memref<16x128xf32, #tpu.memory_space<vmem>>, vector<16x128xf32>
      %13 = arith.addf %12, %2 : vector<16x128xf32>
      %c0_10 = arith.constant 0 : index
      %c0_11 = arith.constant 0 : index
      %14 = vector.load %arg7[%c0_10, %c0_11] : memref<16x128xf32, #tpu.memory_space<vmem>>, vector<16x128xf32>
      tpu.vector_store %arg7[%c0_10, %c0_11], %13 {strides = array<i32>} : memref<16x128xf32, #tpu.memory_space<vmem>>, vector<16x128xf32>,
    } else {
    }
    %c0_i32_6 = arith.constant 0 : i32
    %9 = arith.cmpi eq, %arg2, %c0_i32_6 : i32
    %10 = arith.extui %9 : i1 to i32
    %c0_i32_7 = arith.constant 0 : i32
    %11 = arith.cmpi ne, %10, %c0_i32_7 : i32
    scf.if %11 {
      %c0_8 = arith.constant 0 : index
      %c0_9 = arith.constant 0 : index
      %12 = vector.load %arg7[%c0_8, %c0_9] : memref<16x128xf32, #tpu.memory_space<vmem>>, vector<16x128xf32>
      %c0_10 = arith.constant 0 : index
      %c0_11 = arith.constant 0 : index
      %13 = vector.load %arg5[%c0_10, %c0_11] : memref<1x128xf32, #tpu.memory_space<vmem>>, vector<1x128xf32>
      %14 = vector.broadcast %13 : vector<1x128xf32> to vector<16x128xf32>
      %15 = arith.addf %12, %14 : vector<16x128xf32>
      %16 = arith.truncf %15 : vector<16x128xf32> to vector<16x128xbf16>
      %c0_12 = arith.constant 0 : index
      %c0_13 = arith.constant 0 : index
      %17 = vector.load %arg6[%c0_12, %c0_13] : memref<16x128xbf16, #tpu.memory_space<vmem>>, vector<16x128xbf16>
      tpu.vector_store %arg6[%c0_12, %c0_13], %16 {strides = array<i32>} : memref<16x128xbf16, #tpu.memory_space<vmem>>, vector<16x128xbf16>,
    } else {
    }
    return
  }
  func.func @transform_0(%arg0: i32, %arg1: i32, %arg2: i32) -> (i32, i32) {
    %c0_i32 = arith.constant 0 : i32
    return %arg0, %arg2 : i32, i32
  }
  func.func @transform_1(%arg0: i32, %arg1: i32, %arg2: i32) -> (i32, i32) {
    %c0_i32 = arith.constant 0 : i32
    return %arg2, %arg1 : i32, i32
  }
  func.func @transform_2(%arg0: i32, %arg1: i32, %arg2: i32) -> (i32, i32) {
    %c0_i32 = arith.constant 0 : i32
    %c0_i32_0 = arith.constant 0 : i32
    return %c0_i32, %arg1 : i32, i32
  }
  func.func @transform_3(%arg0: i32, %arg1: i32, %arg2: i32) -> (i32, i32) {
    %c0_i32 = arith.constant 0 : i32
    return %arg0, %arg1 : i32, i32
  }
}

</mosaic_0001>

<bundles_post_ra>
// kernel: tpu_custom_call.1
= control target key start
LH: loop header
LB: loop body
LE: loop exit
PB: predicated region body
PF: predicated region fallthrough
CT: control target
= control target key end

     0   :  { %8 = vsyncpa [#allocation4], 0  ;;  %s352_s0 = inlined_call_operand.hbm [shape: bf16[16,32], index: 0, kind: input, shape index: {}]   ;;  %s353_s1 = inlined_call_operand.hbm [shape: bf16[32,128], index: 1, kind: input, shape index: {}]   ;;  %s354_s2 = inlined_call_operand.vmem [shape: f32[1,128], index: 2, kind: input, shape index: {}]   ;;  %s355_s3 = inlined_call_operand.hbm [shape: bf16[16,128], index: 3, kind: output, shape index: {}]  }
   0x1   :  { %9 = vsyncpa [#allocation7], 0 }
   0x2   :  { %10 = vsyncpa [#allocation5], 0  ;;  %s277_s12 = smov [#allocation3]   ;;  %s205_s16 = scalar_lea.hbm %s352_s0, 128 }
   0x3   :  { %s16_s13 = sshll.u32 %s277_s12, 4  ;;  %p206_p0 = scmp.ne.s32.totalorder %s352_s0, %s205_s16  ;;  %s17_s13 = int_to_ptr.vmem [resolvable:$true] %s16_s13 }
   0x4   :  { %p209_p1 = scmp.lt.u32.totalorder %s205_s16, %s352_s0 }
   0x6   :  { %p211_p2 = pnand %p209_p1, %p206_p0 }
   0x8   :  { %214 = shalt.err (!%p211_p2)
}
   0x9   :  { %s215_s21 = scalar_lea.vmem %s17_s13, 128  ;;  %p220_p4 = scmp.lt.s32.totalorder %s17_s13, %s17_s13 }
   0xa   :  { %p216_p3 = scmp.ne.s32.totalorder %s17_s13, %s215_s21  ;;  %p221_p5 = scmp.lt.s32.totalorder %s215_s21, %s215_s21 }
   0xc   :  { %p222_p6 = por %p221_p5, %p220_p4 }
   0xe   :  { %p223_p7 = pnand %p222_p6, %p216_p3 }
  0x10   :  { %226 = shalt.err (!%p223_p7)
}
  0x11   :  { %s278_s22 = smov 64   ;;  %s279_s23 = smov 4  }
  0x12   :  { %22 = dma.hbm_to_vmem [thread:$0]  %s352_s0, 128, %s17_s13, [#allocation4], %s278_s22, %s278_s22, %s279_s23  }
  0x13   :  { %s280_s26 = smov [#allocation6]   ;;  %s227_s30 = scalar_lea.hbm %s353_s1, 256 }
  0x14   :  { %s28_s27 = sshll.u32 %s280_s26, 4  ;;  %p228_p8 = scmp.ne.s32.totalorder %s353_s1, %s227_s30  ;;  %s29_s27 = int_to_ptr.vmem [resolvable:$true] %s28_s27 }
  0x15   :  { %p231_p9 = scmp.lt.u32.totalorder %s227_s30, %s353_s1 }
  0x17   :  { %p233_p10 = pnand %p231_p9, %p228_p8 }
  0x19   :  { %236 = shalt.err (!%p233_p10)
}
  0x1a   :  { %s237_s8 = scalar_lea.vmem %s29_s27, 256  ;;  %p242_p12 = scmp.lt.s32.totalorder %s29_s27, %s29_s27 }
  0x1b   :  { %p238_p11 = scmp.ne.s32.totalorder %s29_s27, %s237_s8  ;;  %p243_p13 = scmp.lt.s32.totalorder %s237_s8, %s237_s8 }
  0x1d   :  { %p244_p0 = por %p243_p13, %p242_p12 }
  0x1f   :  { %p245_p1 = pnand %p244_p0, %p238_p11 }
  0x21   :  { %248 = shalt.err (!%p245_p1)
}
  0x22   :  { %34 = dma.hbm_to_vmem [thread:$0]  %s353_s1, 256, %s29_s27, [#allocation7], %s278_s22, %s278_s22, %s279_s23  }
  0x23   :  { %271 = dma.done.wait [#allocation4], 128  }
  0x24   :  { %272 = vsyncadd [#allocation4], 4294967168 }
  0x25   :  { %273 = dma.done.wait [#allocation7], 256  }
  0x26   :  { %274 = vsyncadd [#allocation7], 4294967040  ;;  %v281_v0 = vmov 0.0   ;;  %vm282_vm0 = vmmov 0   ;;  %v202_v1 = vld [vmem:[#allocation6] sm:$0xff]   ;;  %v203_v2 = vld [vmem:[#allocation6 + $0x8] sm:$0xff]  }
  0x27   :  { %187 = vmatprep.subr.bf16.mxu0 %v281_v0  ;;  %191 = vmatprep.mubr.msk.bf16.mxu0 %vm282_vm0, %v281_v0  ;;  %v204_v3 = vld [vmem:[#allocation3] sm:$0xff]   ;;  %vm67_vm1 = vcmask 261120   ;;  %s283_s1 = smov [#allocation8]  }
  0x28   :  { %188 = vmatpush3.bf16.msra.mxu0 %v202_v1  ;;  %v174_v5 = vld [vmem:[%s354_s2] ss:$0 sm:$0xff]  ;;  %s157_s12 = sshll.u32 %s283_s1, 4  ;;  %s158_s12 = int_to_ptr.vmem [resolvable:$true] %s157_s12 }
  0x29   :  { %189 = vmatprep.subr.bf16.mxu0 %v281_v0  ;;  %s249_s13 = scalar_lea.vmem %s158_s12, 128  ;;  %p254_p3 = scmp.lt.s32.totalorder %s158_s12, %s158_s12 }
  0x2a   :  { %p250_p2 = scmp.ne.s32.totalorder %s158_s12, %s249_s13  ;;  %p255_p4 = scmp.lt.s32.totalorder %s249_s13, %s249_s13 }
  0x2c   :  { %190 = vmatpush3.bf16.msra.mxu0 %v203_v2  ;;  %p256_p5 = por %p255_p4, %p254_p3 }
  0x2e   :  { %p257_p6 = pnand %p256_p5, %p250_p2 }
  0x2f   :  { %192 = vmatmul.mubr.msk.bf16.vlgmr.msra.gmra.mrb[0].mxu0 %vm67_vm1, %v204_v3 }
 0x102   :  { %v105_v4 = vpop.f32.mrb[0].mxu0 }
 0x103   :  { %v193_v6 = vpop.f32.mrb[1].mxu0  ;;  %v140_v8 = vadd.f32 %v174_v5, %v105_v4 }
 0x104   :  { %v108_v7 = vpop.f32.mrb[2].mxu0 }
 0x105   :  { %v141_v9 = vadd.f32 %v174_v5, %v108_v7  ;;  %v194_v10 = vpop.f32.mrb[3].mxu0 }
 0x107   :  { %v182_v11 = vpack.c.bf16 %v141_v9, %v140_v8 }
 0x109   :  { %183 = vst [vmem:[#allocation8] sm:$0xff] %v182_v11  }
 0x10a   :  { %260 = shalt.err (!%p257_p6)
}
 0x10b   :  { %s261_s2 = scalar_lea.hbm %s355_s3, 128 }
 0x10c   :  { %p262_p7 = scmp.ne.s32.totalorder %s355_s3, %s261_s2  ;;  %p265_p8 = scmp.lt.u32.totalorder %s261_s2, %s355_s3 }
 0x10e   :  { %p267_p9 = pnand %p265_p8, %p262_p7 }
 0x110   :  { %270 = shalt.err (!%p267_p9)
}
 0x111   :  { %163 = dma.vmem_to_hbm [thread:$0]  %s158_s12, 128, %s355_s3, [#allocation5], %s278_s22, %s278_s22, %s279_s23  }
 0x112   :  { %275 = dma.done.wait [#allocation5], 128  }
 0x113   :  { %276 = vsyncadd [#allocation5], 4294967168 }
 0x114   :  { %167 = vsyncpa [#allocation4], 1 }
 0x115   :  { %168 = vsyncpa [#allocation7], 1 }
 0x116   :  { %169 = vsyncpa [#allocation5], 1 }

</bundles_post_ra>
